<compile_context>
chip_gen: v5e
topology: v5e:2x2
jax: 0.10.0
libtpu: 0.0.40
codegen_flags: <defaults>
</compile_context>

<pallas_src>
import functools

import jax
import jax.numpy as jnp
from jax.experimental import pallas as pl
from jax.experimental.pallas import tpu as pltpu

IN_FEATURES = 32
OUT_FEATURES = 2
LANES = 128
PACK = LANES // IN_FEATURES        # 4 original rows folded into one 128-lane packed row


def _round_up(n: int, m: int) -> int:
    return ((n + m - 1) // m) * m


def _mse_kernel(x_ref, w_ref, t_ref, acc_ref):
    """Grid = (split, k).

    x_ref:   (tb, 128)   packed rows of x (streamed, double-buffered)
    w_ref:   (128, 128)  block-diagonal kron(I_4, [w^T | 0])  (VMEM-resident)
    t_ref:   (1, 128)    per-column target: 1.0 on real output columns, else 0.0
    acc_ref: (1, 1, 128) f32 accumulator; one output block per split, resident across k
    """
    k = pl.program_id(1)

    @pl.when(k == 0)
    def _init():
        acc_ref[...] = jnp.zeros_like(acc_ref)

    # One MXU matmul yields all OUT_FEATURES outputs of the PACK rows folded into each
    # packed row; dummy columns are exactly zero because their weights are zero.
    y = jnp.dot(x_ref[...], w_ref[...], preferred_element_type=jnp.float32)   # (tb, 128)
    d = y - t_ref[...]          # broadcast (1,128): real cols -> y - 1, dummy cols -> 0
    # Fold the row (sublane) axis only: VALU vreg adds + one tiny intra-vreg reduce.
    # The lane axis stays intact, so there is no per-step cross-lane tree / scalar RMW.
    partial = jnp.sum(d * d, axis=0, keepdims=True)                            # (1, 128)
    acc_ref[...] += partial[None, :, :]


@functools.partial(jax.jit, static_argnames=("tile_rows", "num_splits"))
def boring_model_forward(x, w, *, tile_rows: int = 8192, num_splits: int = 2):
    """x: [B, 32] (f32 or bf16), w: [2, 32] (nn.Linear weight layout).

    Returns the scalar f32 MSE of x @ w.T against an all-ones target, i.e.
    BoringModel.forward(x).  `tile_rows` is in packed (128-lane) rows; `num_splits`
    is the parallel batch split (use 2 so v7x can shard it across its 2 TensorCores).
    """
    batch, in_f = x.shape
    assert in_f == IN_FEATURES and w.shape == (OUT_FEATURES, IN_FEATURES)

    # ---- static tiling choices -------------------------------------------------------
    rows_min = pl.cdiv(batch, PACK)                       # packed rows actually needed
    # 16-row granule keeps the (tb, 128) block legal for both f32 (8) and bf16 (16).
    tb = max(16, min(int(tile_rows), _round_up(rows_min, 16)))
    tb = _round_up(tb, 16)
    tiles_per_split = max(1, pl.cdiv(rows_min, num_splits * tb))
    rows_total = num_splits * tiles_per_split * tb

    # ---- repack x to a lane-dense (rows_total, 128) layout ----------------------------
    pad_rows = rows_total * PACK - batch                  # zero rows appended (static)
    x_p = jnp.pad(x, ((0, pad_rows), (0, 0))) if pad_rows else x
    x_packed = x_p.reshape(rows_total, LANES)

    # ---- block-diagonal weights + per-column target -----------------------------------
    wt_pad = jnp.pad(jnp.transpose(w),
                     ((0, 0), (0, IN_FEATURES - OUT_FEATURES)))                 # (32, 32)
    w_big = jnp.kron(jnp.eye(PACK, dtype=w.dtype), wt_pad).astype(x.dtype)      # (128, 128)
    col = jnp.arange(LANES) % IN_FEATURES
    target = (col < OUT_FEATURES).astype(jnp.float32).reshape(1, LANES)         # (1, 128)

    out = pl.pallas_call(
        _mse_kernel,
        out_shape=jax.ShapeDtypeStruct((num_splits, 1, LANES), jnp.float32),
        grid=(num_splits, tiles_per_split),
        in_specs=[
            # x: streamed, double-buffered lane-dense tiles (4 MiB f32 at the default tb).
            pl.BlockSpec((tb, LANES), lambda s, k: (s * tiles_per_split + k, 0)),
            # W~ and target: constant block index -> stay resident in VMEM.
            pl.BlockSpec((LANES, LANES), lambda s, k: (0, 0)),
            pl.BlockSpec((1, LANES), lambda s, k: (0, 0)),
        ],
        # One resident accumulator block per split; written back to HBM once per split.
        out_specs=pl.BlockSpec((1, 1, LANES), lambda s, k: (s, 0, 0)),
        compiler_params=pltpu.CompilerParams(
            # split axis: independent batch halves (sharded across the 2 TCs on v7x,
            # plain sequential on v5e/v6e); k axis: the streamed batch reduction.
            dimension_semantics=("parallel", "arbitrary"),
        ),
    )(x_packed, w_big, target)

    # Tiny finalize in the wrapper: every zero-padded original row contributes exactly
    # (0 - 1)^2 = 1 per real output column, so subtract that static constant and
    # normalize by the true element count.
    sse = jnp.sum(out) - jnp.float32(pad_rows * OUT_FEATURES)
    return sse / jnp.float32(batch * OUT_FEATURES)


if __name__ == "__main__":
    key = jax.random.PRNGKey(0)
    k_w, k_x = jax.random.split(key)

    # torch.nn.Linear(32, 2, bias=False) default init: U(-1/sqrt(fan_in), +1/sqrt(fan_in)).
    bound = 1.0 / (IN_FEATURES ** 0.5)
    w = jax.random.uniform(k_w, (OUT_FEATURES, IN_FEATURES),
                           minval=-bound, maxval=bound, dtype=jnp.float32)
    # Snap values to bf16-representable numbers so the check is independent of the
    # XLA / Mosaic f32-matmul precision mode (all partial products are then exact).
    w = w.astype(jnp.bfloat16).astype(jnp.float32)

    cases = [
        dict(batch=16, tile_rows=8192, num_splits=2),   # small batch, one tile per split
        dict(batch=20, tile_rows=16, num_splits=1),     # batch not a multiple of the 4-row pack
        dict(batch=200, tile_rows=16, num_splits=2),    # multi-tile accumulation per split
    ]
    for c in cases:
        x = jax.random.normal(jax.random.fold_in(k_x, c["batch"]),
                              (c["batch"], IN_FEATURES), dtype=jnp.float32)
        x = x.astype(jnp.bfloat16).astype(jnp.float32)
        loss = boring_model_forward(x, w, tile_rows=c["tile_rows"],
                                    num_splits=c["num_splits"])
        jax.block_until_ready(loss)
        ref = jnp.mean((x @ w.T - 1.0) ** 2)
        assert jnp.allclose(loss, ref, rtol=1e-4, atol=1e-5), (c, float(loss), float(ref))

    # bf16 input path (halves HBM bytes at large batch; the kernel accumulates in f32).
    xb = jax.random.normal(jax.random.fold_in(k_x, 999), (64, IN_FEATURES),
                           dtype=jnp.float32).astype(jnp.bfloat16)
    wb = w.astype(jnp.bfloat16)
    loss_b = boring_model_forward(xb, wb, tile_rows=32, num_splits=2)
    jax.block_until_ready(loss_b)
    ref_b = jnp.mean((xb.astype(jnp.float32) @ wb.astype(jnp.float32).T - 1.0) ** 2)
    assert jnp.allclose(loss_b, ref_b, rtol=1e-3, atol=1e-4), (float(loss_b), float(ref_b))

    print("KERNEL_OK")
</pallas_src>

<mosaic_0001>
module attributes {stable_mosaic.version = 11 : i64} {
  func.func @_mse_kernel(%arg0: i32, %arg1: i32, %arg2: memref<16x128xf32, #tpu.memory_space<vmem>>, %arg3: memref<128x128xf32, #tpu.memory_space<vmem>>, %arg4: memref<1x128xf32, #tpu.memory_space<vmem>>, %arg5: memref<1x1x128xf32, #tpu.memory_space<vmem>>) attributes {dimension_semantics = [#tpu.dimension_semantics<parallel>, #tpu.dimension_semantics<arbitrary>], iteration_bounds = array<i64: 2, 1>, scalar_prefetch = 0 : i64, scratch_operands = 0 : i64, tpu.core_type = #tpu.core_type<tc>, window_params = [{transform_indices = @transform_0, window_bounds = array<i64: 16, 128>}, {pipeline_mode = #tpu.pipeline_mode<synchronous>, transform_indices = @transform_1, window_bounds = array<i64: 128, 128>}, {pipeline_mode = #tpu.pipeline_mode<synchronous>, transform_indices = @transform_2, window_bounds = array<i64: 1, 128>}, {transform_indices = @transform_3, window_bounds = array<i64: 1, 1, 128>}]} {
    %c0_i32 = arith.constant 0 : i32
    %0 = arith.cmpi eq, %arg1, %c0_i32 : i32
    %1 = arith.extui %0 : i1 to i32
    %c0_i32_0 = arith.constant 0 : i32
    %2 = arith.cmpi ne, %1, %c0_i32_0 : i32
    scf.if %2 {
      %cst_13 = arith.constant 0.000000e+00 : f32
      %16 = vector.broadcast %cst_13 : f32 to vector<1x1x128xf32>
      %c0_14 = arith.constant 0 : index
      %c0_15 = arith.constant 0 : index
      %c0_16 = arith.constant 0 : index
      %17 = vector.load %arg5[%c0_14, %c0_15, %c0_16] : memref<1x1x128xf32, #tpu.memory_space<vmem>>, vector<1x1x128xf32>
      tpu.vector_store %arg5[%c0_14, %c0_15, %c0_16], %16 {strides = array<i32>} : memref<1x1x128xf32, #tpu.memory_space<vmem>>, vector<1x1x128xf32>,
    } else {
    }
    %c0 = arith.constant 0 : index
    %c0_1 = arith.constant 0 : index
    %3 = vector.load %arg2[%c0, %c0_1] : memref<16x128xf32, #tpu.memory_space<vmem>>, vector<16x128xf32>
    %c0_2 = arith.constant 0 : index
    %c0_3 = arith.constant 0 : index
    %4 = vector.load %arg3[%c0_2, %c0_3] : memref<128x128xf32, #tpu.memory_space<vmem>>, vector<128x128xf32>
    %cst = arith.constant dense<0.000000e+00> : vector<16x128xf32>
    %5 = tpu.matmul %3, %4, %cst {dimension_numbers = #tpu.dot_dimension_numbers<[1], [0], [0], [1], [0, 0, 1, 1], [], []>} : vector<16x128xf32>, vector<128x128xf32>, vector<16x128xf32> -> vector<16x128xf32>
    %c0_4 = arith.constant 0 : index
    %c0_5 = arith.constant 0 : index
    %6 = vector.load %arg4[%c0_4, %c0_5] : memref<1x128xf32, #tpu.memory_space<vmem>>, vector<1x128xf32>
    %7 = vector.broadcast %6 : vector<1x128xf32> to vector<16x128xf32>
    %8 = arith.subf %5, %7 : vector<16x128xf32>
    %9 = arith.mulf %8, %8 : vector<16x128xf32>
    %cst_6 = arith.constant dense<0.000000e+00> : vector<128xf32>
    %10 = vector.multi_reduction <add>, %9, %cst_6 [0] : vector<16x128xf32> to vector<128xf32>
    %11 = vector.shape_cast %10 : vector<128xf32> to vector<1x128xf32>
    %c0_7 = arith.constant 0 : index
    %c0_8 = arith.constant 0 : index
    %c0_9 = arith.constant 0 : index
    %12 = vector.load %arg5[%c0_7, %c0_8, %c0_9] : memref<1x1x128xf32, #tpu.memory_space<vmem>>, vector<1x1x128xf32>
    %13 = vector.shape_cast %11 : vector<1x128xf32> to vector<1x1x128xf32>
    %14 = arith.addf %12, %13 : vector<1x1x128xf32>
    %c0_10 = arith.constant 0 : index
    %c0_11 = arith.constant 0 : index
    %c0_12 = arith.constant 0 : index
    %15 = vector.load %arg5[%c0_10, %c0_11, %c0_12] : memref<1x1x128xf32, #tpu.memory_space<vmem>>, vector<1x1x128xf32>
    tpu.vector_store %arg5[%c0_10, %c0_11, %c0_12], %14 {strides = array<i32>} : memref<1x1x128xf32, #tpu.memory_space<vmem>>, vector<1x1x128xf32>,
    return
  }
  func.func @transform_0(%arg0: i32, %arg1: i32) -> (i32, i32) {
    %c1_i32 = arith.constant 1 : i32
    %0 = arith.muli %arg0, %c1_i32 : i32
    %1 = arith.addi %0, %arg1 : i32
    %c0_i32 = arith.constant 0 : i32
    %c0_i32_0 = arith.constant 0 : i32
    return %1, %c0_i32 : i32, i32
  }
  func.func @transform_1(%arg0: i32, %arg1: i32) -> (i32, i32) {
    %c0_i32 = arith.constant 0 : i32
    %c0_i32_0 = arith.constant 0 : i32
    %c0_i32_1 = arith.constant 0 : i32
    return %c0_i32, %c0_i32_0 : i32, i32
  }
  func.func @transform_2(%arg0: i32, %arg1: i32) -> (i32, i32) {
    %c0_i32 = arith.constant 0 : i32
    %c0_i32_0 = arith.constant 0 : i32
    %c0_i32_1 = arith.constant 0 : i32
    return %c0_i32, %c0_i32_0 : i32, i32
  }
  func.func @transform_3(%arg0: i32, %arg1: i32) -> (i32, i32, i32) {
    %c0_i32 = arith.constant 0 : i32
    %c0_i32_0 = arith.constant 0 : i32
    %c0_i32_1 = arith.constant 0 : i32
    return %arg0, %c0_i32, %c0_i32_0 : i32, i32, i32
  }
}

</mosaic_0001>

<bundles_post_ra>
// kernel: boring_model_forward.1
= control target key start
LH: loop header
LB: loop body
LE: loop exit
PB: predicated region body
PF: predicated region fallthrough
CT: control target
= control target key end

     0   :  { %s403_s12 = smov 0   ;;  %s405_s13 = smov 0   ;;  %s492_s0 = inlined_call_operand.vmem [shape: f32[32,128], index: 0, kind: input, shape index: {}]   ;;  %s493_s1 = inlined_call_operand.vmem [shape: f32[128,128], index: 1, kind: input, shape index: {}]   ;;  %s494_s2 = inlined_call_operand.vmem [shape: f32[1,128], index: 2, kind: input, shape index: {}]   ;;  %s495_s3 = inlined_call_operand.vmem [shape: f32[2,1,128], index: 3, kind: output, shape index: {}]  }
   0x1   :  { %s407_s14 = smov 0  }
   0x2 LB: > { %s25_s15 = sadd.s32 1, %s376_s13  ;;  %p311_p0 = scmp.ge.s32.totalorder %s380_s14, 1  ;;  %s380_s14 = sphi %s407_s14, %s13_s14   ;;  %s376_s13 = sphi %s405_s13, %s497_s13   ;;  %s372_s12 = sphi %s403_s12, %s496_s12  }
   0x3   : > { %p27_p1 = scmp.ge.s32.totalorder %s25_s15, 2  ;;  %p154_p2 = scmp.lt.s32.totalorder %s380_s14, 3 }
   0x5   : > { %s499_s15 = smov (%p27_p1, %s25_s15), 0  ;;  %p155_p3 = pnand %p311_p0, %p154_p2 }
   0x6   : > { %s312_s5 = sshll.u32 (!%p155_p3), %s372_s12, 1  ;;  %p185_p5 = scmp.lt.s32.totalorder (!%p155_p3), %s372_s12, 1 }
   0x7   : > { %158 = sbr.rel (%p155_p3) target bundleno = 191 (0xbf), region = 32  ;;  %p179_p4 = scmp.lt.s32.totalorder (!%p155_p3), %s312_s5, 3 }
   0xc   : > { %v210_v0 = vld [vmem:[%s493_s1 + $0x78] sm:$0xff]  ;;  %v209_v1 = vld [vmem:[%s493_s1 + $0x70] sm:$0xff]  ;;  %v208_v2 = vld [vmem:[%s493_s1 + $0x68] sm:$0xff]  ;;  %s501_s5 = smov (!%p179_p4, %s312_s5), 3  ;;  %s503_s12 = smov (!%p185_p5, %s372_s12), 1  ;;  %v382_v18 = vmov 0.0  }
   0xd   : > { %211 = vmatpush.msra.mxu0 %v210_v0  ;;  %316 = vmatpush.msra.mxu1 %v210_v0  ;;  %v207_v3 = vld [vmem:[%s493_s1 + $0x60] sm:$0xff]  ;;  %v206_v4 = vld [vmem:[%s493_s1 + $0x58] sm:$0xff]  ;;  %v205_v5 = vld [vmem:[%s493_s1 + $0x50] sm:$0xff]  ;;  %s313_s20 = sshll.u32 %s501_s5, 3  ;;  %s187_s5 = scalar_lea.vmem %s495_s3, %s503_s12 }
   0xe   : > { %v204_v6 = vld [vmem:[%s493_s1 + $0x48] sm:$0xff]  ;;  %v203_v7 = vld [vmem:[%s493_s1 + $0x40] sm:$0xff]  ;;  %v202_v8 = vld [vmem:[%s493_s1 + $0x38] sm:$0xff]  ;;  %s182_s27 = scalar_lea.vmem %s492_s0, %s313_s20  ;;  %192 = vst [vmem:[%s187_s5] sm:$0x1] %v382_v18 }
   0xf   : > { %212 = vmatpush.msra.mxu0 %v209_v1  ;;  %317 = vmatpush.msra.mxu1 %v209_v1  ;;  %v201_v9 = vld [vmem:[%s493_s1 + $0x30] sm:$0xff]  ;;  %v200_v10 = vld [vmem:[%s493_s1 + $0x28] sm:$0xff]  ;;  %v199_v11 = vld [vmem:[%s493_s1 + $0x20] sm:$0xff] }
  0x10   : > { %v198_v12 = vld [vmem:[%s493_s1 + $0x18] sm:$0xff]  ;;  %v197_v13 = vld [vmem:[%s493_s1 + $0x10] sm:$0xff]  ;;  %v196_v14 = vld [vmem:[%s493_s1 + $0x8] sm:$0xff] }
  0x11   : > { %213 = vmatpush.msra.mxu0 %v208_v2  ;;  %318 = vmatpush.msra.mxu1 %v208_v2  ;;  %v195_v15 = vld [vmem:[%s493_s1] sm:$0xff]  ;;  %v194_v17 = vld [vmem:[%s182_s27 + $0x8] sm:$0xff] }
  0x12   : > { %v193_v16 = vld [vmem:[%s182_s27] sm:$0xff] }
  0x13   : > { %214 = vmatpush.msra.mxu0 %v207_v3  ;;  %319 = vmatpush.msra.mxu1 %v207_v3  ;;  %v357_v19 = vld [vmem:[%s494_s2] ss:$0 sm:$0xff] }
  0x15   : > { %215 = vmatpush.msra.mxu0 %v206_v4  ;;  %320 = vmatpush.msra.mxu1 %v206_v4  ;;  %v249_v32 = vld [vmem:[%s187_s5] sm:$0x1] }
  0x17   : > { %216 = vmatpush.msra.mxu0 %v205_v5  ;;  %321 = vmatpush.msra.mxu1 %v205_v5 }
  0x19   : > { %217 = vmatpush.msra.mxu0 %v204_v6  ;;  %322 = vmatpush.msra.mxu1 %v204_v6 }
  0x1b   : > { %218 = vmatpush.msra.mxu0 %v203_v7  ;;  %323 = vmatpush.msra.mxu1 %v203_v7 }
  0x1d   : > { %219 = vmatpush.msra.mxu0 %v202_v8  ;;  %324 = vmatpush.msra.mxu1 %v202_v8 }
  0x1f   : > { %220 = vmatpush.msra.mxu0 %v201_v9  ;;  %325 = vmatpush.msra.mxu1 %v201_v9 }
  0x21   : > { %221 = vmatpush.msra.mxu0 %v200_v10  ;;  %326 = vmatpush.msra.mxu1 %v200_v10 }
  0x23   : > { %222 = vmatpush.msra.mxu0 %v199_v11  ;;  %327 = vmatpush.msra.mxu1 %v199_v11 }
  0x25   : > { %223 = vmatpush.msra.mxu0 %v198_v12  ;;  %328 = vmatpush.msra.mxu1 %v198_v12 }
  0x27   : > { %224 = vmatpush.msra.mxu0 %v197_v13  ;;  %329 = vmatpush.msra.mxu1 %v197_v13 }
  0x29   : > { %225 = vmatpush.msra.mxu0 %v196_v14  ;;  %330 = vmatpush.msra.mxu1 %v196_v14 }
  0x2b   : > { %226 = vmatpush.msra.mxu0 %v195_v15  ;;  %331 = vmatpush.msra.mxu1 %v195_v15 }
  0x2c   : > { %227 = vmatmul.f32.vlgmr.msra.gmra.mxu0 %v193_v16  ;;  %230 = vmatmul.f32.vlgmr.msra.gmra.mxu1 %v194_v17 }
  0xa9   : > { %v228_v20 = vpop.f32.mrf.mxu0  ;;  %v231_v21 = vpop.f32.mrf.mxu1 }
  0xaa   : > { %v238_v22 = vsub.f32 %v228_v20, %v357_v19  ;;  %v239_v23 = vsub.f32 %v231_v21, %v357_v19 }
  0xac   : > { %v240_v24 = vmul.f32 %v238_v22, %v238_v22  ;;  %v241_v25 = vmul.f32 %v239_v23, %v239_v23 }
  0xae   : > { %v242_v26 = vadd.f32 %v241_v25, %v240_v24 }
  0xb0   : > { %v243_v27 = vrot.slane %v242_v26, 4 }
  0xb2   : > { %v244_v28 = vadd.f32 %v243_v27, %v242_v26 }
  0xb4   : > { %v245_v29 = vrot.slane %v244_v28, 2 }
  0xb6   : > { %v246_v30 = vadd.f32 %v245_v29, %v244_v28 }
  0xb8   : > { %v247_v31 = vrot.slane %v246_v30, 1 }
  0xba   : > { %v248_v33 = vadd.f32 %v247_v31, %v246_v30 }
  0xbc   : > { %v250_v34 = vadd.f32 %v249_v32, %v248_v33 }
  0xbe   : > { %251 = vst [vmem:[%s187_s5] sm:$0x1] %v250_v34 }
  0xbf PF: > { %s13_s14 = sadd.s32 1, %s380_s14   ;;  %s496_s12 = smov %s376_s13 }
  0xc0   : > { %p10_p6 = scmp.ge.s32.totalorder %s13_s14, 4   ;;  %s497_s13 = smov %s499_s15 }
  0xc2   :  { %12 = sbr.rel (!%p10_p6) target bundleno = 2 (0x2), region = 66 }

</bundles_post_ra>
